<compile_context>
chip_gen: v5e
topology: v5e:2x2
jax: 0.10.0
libtpu: 0.0.40
codegen_flags: <defaults>
</compile_context>

<pallas_src>
import jax
import jax.numpy as jnp
from jax.experimental import pallas as pl
from jax.experimental.pallas import tpu as pltpu


def _round_up(x, m):
    return ((x + m - 1) // m) * m


def _round_down(x, m):
    return (x // m) * m


def _sublane_unit(dtype):
    # Second-to-last block dim must be a multiple of this (or equal the full
    # array dim): 8 for 32-bit, 16 for 16-bit, 32 for 8-bit dtypes.
    return max(8, 32 // jnp.dtype(dtype).itemsize)


def _pick_budget():
    """(per-step input tile byte budget, scoped vmem_limit_bytes) per TPU gen."""
    try:
        kind = jax.devices()[0].device_kind.lower()
    except Exception:
        kind = ""
    if "v7" in kind or "7x" in kind:
        # 64 MiB physical VMEM, ~3.2 TB/s per TC: 16 MiB tiles (32 MiB double-
        # buffered) keep the ~0.35 us/step overhead down at a few percent.
        return 16 * 1024 * 1024, 48 * 1024 * 1024
    if "v5" in kind or "v6" in kind:
        # 128 MiB physical VMEM: 8 MiB tiles; raise the scoped limit (default
        # is far smaller than physical).
        return 8 * 1024 * 1024, 64 * 1024 * 1024
    # Unknown generation: stay conservative.
    return 8 * 1024 * 1024, 32 * 1024 * 1024


def _make_pooled_sum_kernel(hw_valid, hw_blk, needs_mask):
    """Returns kernel(x_ref, o_ref) accumulating row-sums into (row_blk, 128)."""
    n_lane_tiles = hw_blk // 128

    def kernel(x_ref, o_ref):
        h = pl.program_id(1)

        @pl.when(h == 0)
        def _():
            o_ref[...] = jnp.zeros_like(o_ref)

        def accumulate(mask_tail):
            # Lane-dense accumulation: fold hw_blk lanes into 128 partial-sum
            # lanes with plain VPU adds.  Always accumulate in float32 so bf16
            # inputs do not lose precision over large H*W.
            acc = jnp.zeros(o_ref.shape, jnp.float32)
            base = h * hw_blk
            for t in range(n_lane_tiles):
                xt = x_ref[:, pl.ds(t * 128, 128)].astype(jnp.float32)
                if mask_tail:
                    lane = jax.lax.broadcasted_iota(jnp.int32, xt.shape, 1)
                    xt = jnp.where(base + t * 128 + lane < hw_valid, xt, 0.0)
                acc = acc + xt
            o_ref[...] += acc

        if needs_mask:
            # Only the last hw step can hang past the array; mask its garbage
            # tail there and keep all other steps mask-free.
            last = pl.num_programs(1) - 1

            @pl.when(h != last)
            def _():
                accumulate(False)

            @pl.when(h == last)
            def _():
                accumulate(True)
        else:
            accumulate(False)

    return kernel


def make_style(x, *, tile_byte_budget=None):
    """x: (N, C, *spatial) -> (N, C) L2-normalized global-average-pool style.

    Handles both the dim=2 and dim=3 cases of the PyTorch module (all trailing
    spatial dims are pooled).  `tile_byte_budget` overrides the per-step input
    tile size (testing / tuning only)."""
    N, C = x.shape[0], x.shape[1]
    hw = 1
    for s in x.shape[2:]:
        hw *= s
    rows = N * C
    x2d = x.reshape(rows, hw)

    itemsize = jnp.dtype(x.dtype).itemsize
    sub = _sublane_unit(x.dtype)
    budget, vmem_limit = _pick_budget()
    if tile_byte_budget is not None:
        budget = int(tile_byte_budget)

    # --- lane (hw) extent ----------------------------------------------------
    if hw < 128:
        # Tiny-spatial corner: pad the lane axis up to one full lane tile with
        # zeros (zeros are neutral for the sum; cost is negligible).
        x2d = jnp.pad(x2d, ((0, 0), (0, 128 - hw)))
    hw_arr = x2d.shape[1]
    hw_ext = _round_up(hw_arr, 128)

    # --- row block (byte budget) ----------------------------------------------
    row_cap = max(256, min(8192, _round_down(budget // (hw_ext * itemsize), sub)))
    row_blk = rows if rows <= row_cap else row_cap  # full-dim or multiple of sub

    # Give v7x's second TensorCore work: if all rows fit one block but there is
    # more than one tile of data, split the row axis in two.  hw_blk is derived
    # afterwards, so total bytes and step count are unchanged on single-TC chips.
    total_bytes = rows * hw * itemsize
    if rows <= row_cap and rows >= 2 * sub and total_bytes >= 2 * budget:
        row_blk = _round_up((rows + 1) // 2, sub)

    # --- hw block (byte budget, multiple of 128) -------------------------------
    # Use max(row_blk, sub) in the divisor so the VMEM footprint stays bounded
    # even if sub-sublane row blocks get padded to a full tile in VMEM.
    hw_blk = min(hw_ext,
                 max(128, _round_down(budget // (max(row_blk, sub) * itemsize), 128)))

    n_row = pl.cdiv(rows, row_blk)
    n_hw = pl.cdiv(hw_arr, hw_blk)
    # Garbage past the array end exists only when the hw grid overshoots the
    # (unpadded) array; the hw < 128 padded case is exact and already zeros.
    needs_mask = (n_hw * hw_blk) > hw_arr

    kernel = _make_pooled_sum_kernel(hw, hw_blk, needs_mask)

    pooled_sum = pl.pallas_call(
        kernel,
        out_shape=jax.ShapeDtypeStruct((rows, 128), jnp.float32),
        grid_spec=pltpu.PrefetchScalarGridSpec(
            num_scalar_prefetch=0,
            grid=(n_row, n_hw),
            in_specs=[pl.BlockSpec((row_blk, hw_blk), lambda r, h: (r, h))],
            out_specs=pl.BlockSpec((row_blk, 128), lambda r, h: (r, 0)),
        ),
        compiler_params=pltpu.CompilerParams(
            dimension_semantics=("parallel", "arbitrary"),
            vmem_limit_bytes=vmem_limit,
        ),
        cost_estimate=pl.CostEstimate(
            flops=rows * hw,
            transcendentals=0,
            bytes_accessed=rows * hw * itemsize + rows * 128 * 4,
        ),
    )(x2d)

    # Tiny O(N*C) epilogue in plain JAX: finish the 128-lane reduce, scale the
    # sum to a mean, then L2-normalize over channels.
    pooled = (jnp.sum(pooled_sum, axis=1) / float(hw)).reshape(N, C)
    # Matches torch exactly (no epsilon): style / sqrt(sum(style**2, axis=1)).
    norm = jnp.sqrt(jnp.sum(pooled * pooled, axis=1, keepdims=True))
    return (pooled / norm).astype(x.dtype)


def _reference(x):
    spatial_axes = tuple(range(2, x.ndim))
    pooled = jnp.mean(x.astype(jnp.float32), axis=spatial_axes)
    norm = jnp.sqrt(jnp.sum(pooled ** 2, axis=1, keepdims=True))
    return (pooled / norm).astype(x.dtype)


if __name__ == "__main__":
    # 1) Module's default small 2-D case.
    x = jax.random.normal(jax.random.PRNGKey(0), (2, 4, 16, 16), dtype=jnp.float32)
    out = jax.block_until_ready(make_style(x))
    ref = _reference(x)
    assert out.shape == (2, 4)
    assert jnp.allclose(out, ref, atol=1e-5, rtol=1e-5), (
        f"mismatch 1: max abs diff = {jnp.max(jnp.abs(out - ref))}"
    )

    # 2) Rows not a multiple of 8 (full-dim row block) and hw spanning many
    #    128-lane tiles inside one step.
    x2 = jax.random.normal(jax.random.PRNGKey(1), (1, 6, 96, 96), dtype=jnp.float32)
    out2 = jax.block_until_ready(make_style(x2))
    ref2 = _reference(x2)
    assert out2.shape == (1, 6)
    assert jnp.allclose(out2, ref2, atol=1e-5, rtol=1e-5), (
        f"mismatch 2: max abs diff = {jnp.max(jnp.abs(out2 - ref2))}"
    )

    # 3) Multi-step hw reduction with a ragged, masked last block
    #    (hw = 2500, tiny forced tile budget -> 3 hw steps).
    x3 = jax.random.normal(jax.random.PRNGKey(2), (2, 4, 50, 50), dtype=jnp.float32)
    out3 = jax.block_until_ready(make_style(x3, tile_byte_budget=32 * 1024))
    ref3 = _reference(x3)
    assert out3.shape == (2, 4)
    assert jnp.allclose(out3, ref3, atol=1e-5, rtol=1e-5), (
        f"mismatch 3: max abs diff = {jnp.max(jnp.abs(out3 - ref3))}"
    )

    # 4) bf16 input (exercises the dtype-aware sublane unit and f32 accumulation).
    x4 = jax.random.normal(jax.random.PRNGKey(3), (2, 4, 16, 16)).astype(jnp.bfloat16)
    out4 = jax.block_until_ready(make_style(x4))
    ref4 = _reference(x4)
    assert out4.shape == (2, 4)
    assert jnp.allclose(out4.astype(jnp.float32), ref4.astype(jnp.float32),
                        atol=2e-2, rtol=2e-2), (
        f"mismatch 4: max abs diff = "
        f"{jnp.max(jnp.abs(out4.astype(jnp.float32) - ref4.astype(jnp.float32)))}"
    )

    print("KERNEL_OK")
</pallas_src>

<mosaic_0001>
module attributes {stable_mosaic.version = 11 : i64} {
  func.func @kernel(%arg0: i32, %arg1: i32, %arg2: memref<8x256xf32, #tpu.memory_space<vmem>>, %arg3: memref<8x128xf32, #tpu.memory_space<vmem>>) attributes {dimension_semantics = [#tpu.dimension_semantics<parallel>, #tpu.dimension_semantics<arbitrary>], iteration_bounds = array<i64: 1, 1>, scalar_prefetch = 0 : i64, scratch_operands = 0 : i64, tpu.core_type = #tpu.core_type<tc>, window_params = [{transform_indices = @transform_0, window_bounds = array<i64: 8, 256>}, {transform_indices = @transform_1, window_bounds = array<i64: 8, 128>}]} {
    %c0_i32 = arith.constant 0 : i32
    %0 = arith.cmpi eq, %arg1, %c0_i32 : i32
    %1 = arith.extui %0 : i1 to i32
    %c0_i32_0 = arith.constant 0 : i32
    %2 = arith.cmpi ne, %1, %c0_i32_0 : i32
    scf.if %2 {
      %cst_7 = arith.constant 0.000000e+00 : f32
      %11 = vector.broadcast %cst_7 : f32 to vector<8x128xf32>
      %c0_8 = arith.constant 0 : index
      %c0_9 = arith.constant 0 : index
      %12 = vector.load %arg3[%c0_8, %c0_9] : memref<8x128xf32, #tpu.memory_space<vmem>>, vector<8x128xf32>
      tpu.vector_store %arg3[%c0_8, %c0_9], %11 {strides = array<i32>} : memref<8x128xf32, #tpu.memory_space<vmem>>, vector<8x128xf32>,
    } else {
    }
    %cst = arith.constant 0.000000e+00 : f32
    %3 = vector.broadcast %cst : f32 to vector<8x128xf32>
    %c0 = arith.constant 0 : index
    %c0_1 = arith.constant 0 : index
    %4 = vector.load %arg2[%c0, %c0_1] : memref<8x256xf32, #tpu.memory_space<vmem>>, vector<8x128xf32>
    %5 = arith.addf %3, %4 : vector<8x128xf32>
    %c0_2 = arith.constant 0 : index
    %c128 = arith.constant 128 : index
    %6 = vector.load %arg2[%c0_2, %c128] : memref<8x256xf32, #tpu.memory_space<vmem>>, vector<8x128xf32>
    %7 = arith.addf %5, %6 : vector<8x128xf32>
    %c0_3 = arith.constant 0 : index
    %c0_4 = arith.constant 0 : index
    %8 = vector.load %arg3[%c0_3, %c0_4] : memref<8x128xf32, #tpu.memory_space<vmem>>, vector<8x128xf32>
    %9 = arith.addf %8, %7 : vector<8x128xf32>
    %c0_5 = arith.constant 0 : index
    %c0_6 = arith.constant 0 : index
    %10 = vector.load %arg3[%c0_5, %c0_6] : memref<8x128xf32, #tpu.memory_space<vmem>>, vector<8x128xf32>
    tpu.vector_store %arg3[%c0_5, %c0_6], %9 {strides = array<i32>} : memref<8x128xf32, #tpu.memory_space<vmem>>, vector<8x128xf32>,
    return
  }
  func.func @transform_0(%arg0: i32, %arg1: i32) -> (i32, i32) {
    %c0_i32 = arith.constant 0 : i32
    return %arg0, %arg1 : i32, i32
  }
  func.func @transform_1(%arg0: i32, %arg1: i32) -> (i32, i32) {
    %c0_i32 = arith.constant 0 : i32
    %c0_i32_0 = arith.constant 0 : i32
    return %arg0, %c0_i32 : i32, i32
  }
}

</mosaic_0001>

<bundles_post_ra>
// kernel: tpu_custom_call.1
= control target key start
LH: loop header
LB: loop body
LE: loop exit
PB: predicated region body
PF: predicated region fallthrough
CT: control target
= control target key end

     0   :  { %6 = vsyncpa [#allocation3], 0  ;;  %s125_s0 = inlined_call_operand.hbm [shape: f32[8,256], index: 0, kind: input, shape index: {}]   ;;  %s126_s1 = inlined_call_operand.hbm [shape: f32[8,128], index: 1, kind: output, shape index: {}]  }
   0x1   :  { %7 = vsyncpa [#allocation4], 0  ;;  %s13_s8 = sshll.u32 %s125_s0, 4  ;;  %s107_s9 = smov [#allocation2]   ;;  %s14_s8 = int_to_ptr.hbm [resolvable:$true] %s13_s8 }
   0x2   :  { %s15_s10 = sshll.u32 %s107_s9, 4  ;;  %s16_s10 = int_to_ptr.vmem [resolvable:$true] %s15_s10 }
   0x3   :  { %18 = dma.hbm_to_vmem [thread:$0]  %s14_s8, 256, %s16_s10, [#allocation3]  }
   0x4   :  { %103 = dma.done.wait [#allocation3], 256  }
   0x5   :  { %104 = vsyncadd [#allocation3], 4294967040  ;;  %v28_v0 = vld [vmem:[#allocation2] sm:$0xff]  ;;  %v30_v1 = vld [vmem:[#allocation2 + $0x8] sm:$0xff]  ;;  %s108_s11 = smov [#allocation5]   ;;  %s42_s15 = sshll.u32 %s126_s1, 4  ;;  %s43_s15 = int_to_ptr.hbm [resolvable:$true] %s42_s15 }
   0x6   :  { %s40_s12 = sshll.u32 %s108_s11, 4  ;;  %v31_v2 = vadd.f32 %v30_v1, %v28_v0  ;;  %s41_s12 = int_to_ptr.vmem [resolvable:$true] %s40_s12 }
   0x8   :  { %34 = vst [vmem:[#allocation5] sm:$0xff] %v31_v2 }
   0x9   :  { %45 = dma.vmem_to_hbm [thread:$0]  %s41_s12, 128, %s43_s15, [#allocation4]  }
   0xa   :  { %105 = dma.done.wait [#allocation4], 128  }
   0xb   :  { %106 = vsyncadd [#allocation4], 4294967168 }
   0xc   :  { %50 = vsyncpa [#allocation3], 1 }
   0xd   :  { %51 = vsyncpa [#allocation4], 1 }

</bundles_post_ra>
